<compile_context>
chip_gen: v5e
topology: v5e:2x2
jax: 0.10.0
libtpu: 0.0.40
codegen_flags: <defaults>
</compile_context>

<pallas_src>
import jax
import jax.numpy as jnp
from jax import lax
from jax.experimental import pallas as pl
from jax.experimental.pallas import tpu as pltpu

_NEG_BIG = -1e30  # additive mask for invalid time positions (finite: avoids inf/NaN paths)


# ---------------------------------------------------------------------------
# Fused kernel: conv(all filter sizes) + ReLU + MaxPool + concat + dropout + FC
#   x_ref     : (TB, S_pad, E)      bf16   (sentence padded to Tpad + Kmax - 1)
#   wconv_ref : (Kmax*E, NFP)       bf16   (all filters, taps zero-padded to Kmax,
#                                           output channels zero-padded to NFP lanes)
#   bconv_ref : (1, NFP)            f32
#   tmask_ref : (Tpad, NFP)         f32    (0 where t valid for that filter, -1e30 otherwise)
#   drop_ref  : (TB, NFP)           f32    (pre-scaled dropout mask, lane-padded)
#   wfc_ref   : (NFP, LP)           bf16   (fc weight, zero-padded rows/cols)
#   bfc_ref   : (1, LP)             f32    (fc bias, lane-padded)
#   out_ref   : (TB, LP)            f32    (lane-dense logits slab)
# ---------------------------------------------------------------------------
def textcnn_fused_kernel(x_ref, wconv_ref, bconv_ref, tmask_ref, drop_ref,
                         wfc_ref, bfc_ref, out_ref):
    TB, S_pad, E = x_ref.shape
    KE, NFP = wconv_ref.shape
    Kmax = KE // E
    Tpad = tmask_ref.shape[0]            # multiple of 8 -> all row slices tile-aligned

    # ---- whole-tile im2col: stack every sample's (Tpad, Kmax*E) window matrix
    #      along sublanes -> (TB*Tpad, Kmax*E).  All slices/concats are static.
    cols = []
    for b in range(TB):
        xb = x_ref[b]                                            # (S_pad, E) bf16
        cols.append(jnp.concatenate(
            [xb[k:k + Tpad, :] for k in range(Kmax)], axis=-1))  # (Tpad, Kmax*E)
    xcol = jnp.concatenate(cols, axis=0)                         # (TB*Tpad, Kmax*E)

    # ---- ONE MXU matmul covers all samples AND all filter sizes.
    conv = jnp.dot(xcol, wconv_ref[...],
                   preferred_element_type=jnp.float32)           # (TB*Tpad, NFP) f32

    # ---- masked max-pool over time, per sample (static, sublane-aligned slices).
    tmask = tmask_ref[...]                                       # (Tpad, NFP)
    pooled = jnp.concatenate(
        [jnp.max(conv[b * Tpad:(b + 1) * Tpad, :] + tmask, axis=0, keepdims=True)
         for b in range(TB)], axis=0)                            # (TB, NFP)

    # ---- bias + ReLU hoisted after the pool (ReLU monotone, bias const in t).
    feat = jnp.maximum(pooled + bconv_ref[...], 0.0)             # (TB, NFP) f32

    # ---- dropout (pre-scaled mask) + FC, lane-dense (TB, LP) output.
    h = (feat * drop_ref[...]).astype(wfc_ref.dtype)             # bf16
    logits = jnp.dot(h, wfc_ref[...],
                     preferred_element_type=jnp.float32) + bfc_ref[...]
    out_ref[...] = logits.astype(out_ref.dtype)


# ---------------------------------------------------------------------------
# One-time parameter preparation (layout transforms hoisted out of forward).
# ---------------------------------------------------------------------------
def prepare_params(params, sentence_max_size):
    convs = params["convs"]                       # list of (k, wc (F,1,k,E), bc (F,))
    fsz = [k for (k, _, _) in convs]
    F = convs[0][1].shape[0]
    E = convs[0][1].shape[3]
    S = sentence_max_size
    Kmax, Kmin = max(fsz), min(fsz)
    Tmax = S - Kmin + 1
    Tpad = pl.cdiv(Tmax, 8) * 8                   # sublane-aligned pooling window
    NF = F * len(convs)
    NFP = pl.cdiv(NF, 128) * 128                  # lane-dense feature width
    L = params["fc_w"].shape[0]
    LP = pl.cdiv(L, 128) * 128                    # lane-dense logits width

    w_cols, b_cols, m_cols = [], [], []
    for (k, wc, bc) in convs:
        w_kef = jnp.transpose(wc[:, 0], (1, 2, 0))                    # (k, E, F)
        w_pad = jnp.pad(w_kef, ((0, Kmax - k), (0, 0), (0, 0)))       # (Kmax, E, F)
        w_cols.append(w_pad.reshape(Kmax * E, F))
        b_cols.append(bc)
        t_valid = S - k + 1
        col = jnp.where(jnp.arange(Tpad) < t_valid, 0.0, _NEG_BIG)
        m_cols.append(jnp.broadcast_to(col[:, None], (Tpad, F)))

    w_conv = jnp.concatenate(w_cols, axis=1)                          # (Kmax*E, NF)
    w_conv = jnp.pad(w_conv, ((0, 0), (0, NFP - NF))).astype(jnp.bfloat16)
    b_conv = jnp.concatenate(b_cols).reshape(1, NF)
    b_conv = jnp.pad(b_conv, ((0, 0), (0, NFP - NF))).astype(jnp.float32)
    t_mask = jnp.concatenate(m_cols, axis=1)                          # (Tpad, NF)
    t_mask = jnp.pad(t_mask, ((0, 0), (0, NFP - NF))).astype(jnp.float32)

    w_fc = jnp.zeros((NFP, LP), jnp.float32).at[:NF, :L].set(params["fc_w"].T)
    w_fc = w_fc.astype(jnp.bfloat16)
    b_fc = jnp.zeros((1, LP), jnp.float32).at[0, :L].set(params["fc_b"])

    return dict(w_conv=w_conv, b_conv=b_conv, t_mask=t_mask,
                w_fc=w_fc, b_fc=b_fc,
                S=S, E=E, Kmax=Kmax, Tpad=Tpad, NF=NF, NFP=NFP, L=L, LP=LP)


# ---------------------------------------------------------------------------
# Forward wrapper: one fused pallas_call.
# ---------------------------------------------------------------------------
def textcnn_forward(x, prep, dropout_mask):
    # x: (B, 1, S, E) float32 (already embedded, NCHW with channel_in = 1)
    B = x.shape[0]
    S, E = prep["S"], prep["E"]
    Kmax, Tpad = prep["Kmax"], prep["Tpad"]
    NF, NFP, L, LP = prep["NF"], prep["NFP"], prep["L"], prep["LP"]
    S_pad = Tpad + Kmax - 1

    x2d = x[:, 0, :, :]                          # (B, S, E)
    pad = S_pad - S
    if pad:
        # zero tail rows only hit zero-padded taps / masked positions -> no effect
        x2d = jnp.pad(x2d, ((0, 0), (0, pad), (0, 0)))
    x2d = x2d.astype(jnp.bfloat16)

    drop = dropout_mask.astype(jnp.float32)
    if NFP > NF:
        drop = jnp.pad(drop, ((0, 0), (0, NFP - NF)))

    # Batch tile: multiples of 8 when possible (sublane-aligned, and a grid > 1
    # lets v7x shard the "parallel" axis across its two TensorCores).
    TB = 8 if (B % 8 == 0) else B
    grid = (B // TB,)

    out = pl.pallas_call(
        textcnn_fused_kernel,
        out_shape=jax.ShapeDtypeStruct((B, LP), jnp.float32),
        grid=grid,
        in_specs=[
            pl.BlockSpec((TB, S_pad, E), lambda b: (b, 0, 0)),       # x
            pl.BlockSpec((Kmax * E, NFP), lambda b: (0, 0)),         # conv weights (im2col)
            pl.BlockSpec((1, NFP), lambda b: (0, 0)),                # conv bias
            pl.BlockSpec((Tpad, NFP), lambda b: (0, 0)),             # time-validity mask
            pl.BlockSpec((TB, NFP), lambda b: (b, 0)),               # dropout mask
            pl.BlockSpec((NFP, LP), lambda b: (0, 0)),               # fc weight
            pl.BlockSpec((1, LP), lambda b: (0, 0)),                 # fc bias
        ],
        out_specs=pl.BlockSpec((TB, LP), lambda b: (b, 0)),
        compiler_params=pltpu.CompilerParams(
            dimension_semantics=("parallel",)),
    )(x2d, prep["w_conv"], prep["b_conv"], prep["t_mask"], drop,
      prep["w_fc"], prep["b_fc"])

    return out[:, :L]                            # slice lane padding -> (B, label_num)


# ---------------------------------------------------------------------------
# Pure-JAX reference (lax.conv) using the same bf16-rounded operands.
# ---------------------------------------------------------------------------
def _rt_bf16(a):
    return a.astype(jnp.bfloat16).astype(jnp.float32)


def textcnn_reference(x, params, dropout_mask):
    xr = _rt_bf16(x)
    pooled = []
    for (_, wc, bc) in params["convs"]:
        y = lax.conv_general_dilated(
            xr, _rt_bf16(wc), window_strides=(1, 1), padding="VALID",
            dimension_numbers=("NCHW", "OIHW", "NCHW"),
            precision=lax.Precision.HIGHEST)
        y = y + bc.reshape(1, -1, 1, 1)
        y = jnp.maximum(y, 0.0)
        y = jnp.max(y, axis=(2, 3))
        pooled.append(y)
    feat = jnp.concatenate(pooled, axis=1)
    feat = feat * dropout_mask
    h = _rt_bf16(feat)
    return jnp.dot(h, _rt_bf16(params["fc_w"].T),
                   precision=lax.Precision.HIGHEST) + params["fc_b"]


if __name__ == "__main__":
    # Small shapes consistent with the module's forward.
    B, S, E = 2, 16, 32            # batch, sentence_max_size, embedding_dim
    filter_num = 8
    filter_sizes = [2, 3, 4]
    label_num = 4

    key = jax.random.PRNGKey(0)
    keys = jax.random.split(key, 10)

    # Already-embedded input, NCHW with channel_in = 1.
    x = jax.random.normal(keys[0], (B, 1, S, E), dtype=jnp.float32)

    # Deterministic parameter init (shapes from nn.Conv2d / nn.Linear in __init__).
    convs = []
    for i, k in enumerate(filter_sizes):
        wc = 0.1 * jax.random.normal(keys[1 + i], (filter_num, 1, k, E), jnp.float32)
        bc = 0.01 * jax.random.normal(keys[4 + i], (filter_num,), jnp.float32)
        convs.append((k, wc, bc))
    NF = filter_num * len(filter_sizes)
    fc_w = 0.1 * jax.random.normal(keys[7], (label_num, NF), jnp.float32)
    fc_b = 0.01 * jax.random.normal(keys[8], (label_num,), jnp.float32)
    params = {"convs": convs, "fc_w": fc_w, "fc_b": fc_b}

    # One-time layout prep (transpose / pad / concat / lane-pad) outside forward.
    prep = prepare_params(params, S)

    # F.dropout(out) defaults: p=0.5, training=True -> keep w.p. 0.5, scale 1/(1-p).
    # TODO(synk): torch's internal dropout RNG stream cannot be matched; mask is
    # generated deterministically in JAX glue and applied inside the fused kernel.
    p = 0.5
    keep = jax.random.bernoulli(keys[9], 1.0 - p, (B, NF))
    dropout_mask = keep.astype(jnp.float32) / (1.0 - p)

    out = textcnn_forward(x, prep, dropout_mask)
    out = jax.block_until_ready(out)

    ref = textcnn_reference(x, params, dropout_mask)
    assert out.shape == (B, label_num), out.shape
    assert jnp.allclose(out, ref, atol=2e-3, rtol=2e-3), (out, ref)

    print("KERNEL_OK")
</pallas_src>

<mosaic_0001>
module attributes {stable_mosaic.version = 11 : i64} {
  func.func @textcnn_fused_kernel(%arg0: i32, %arg1: memref<2x19x32xbf16, #tpu.memory_space<vmem>>, %arg2: memref<128x128xbf16, #tpu.memory_space<vmem>>, %arg3: memref<1x128xf32, #tpu.memory_space<vmem>>, %arg4: memref<16x128xf32, #tpu.memory_space<vmem>>, %arg5: memref<2x128xf32, #tpu.memory_space<vmem>>, %arg6: memref<128x128xbf16, #tpu.memory_space<vmem>>, %arg7: memref<1x128xf32, #tpu.memory_space<vmem>>, %arg8: memref<2x128xf32, #tpu.memory_space<vmem>>) attributes {dimension_semantics = [#tpu.dimension_semantics<parallel>], iteration_bounds = array<i64: 1>, scalar_prefetch = 0 : i64, scratch_operands = 0 : i64, tpu.core_type = #tpu.core_type<tc>, window_params = [{transform_indices = @transform_0, window_bounds = array<i64: 2, 19, 32>}, {pipeline_mode = #tpu.pipeline_mode<synchronous>, transform_indices = @transform_1, window_bounds = array<i64: 128, 128>}, {pipeline_mode = #tpu.pipeline_mode<synchronous>, transform_indices = @transform_2, window_bounds = array<i64: 1, 128>}, {pipeline_mode = #tpu.pipeline_mode<synchronous>, transform_indices = @transform_3, window_bounds = array<i64: 16, 128>}, {transform_indices = @transform_4, window_bounds = array<i64: 2, 128>}, {pipeline_mode = #tpu.pipeline_mode<synchronous>, transform_indices = @transform_5, window_bounds = array<i64: 128, 128>}, {pipeline_mode = #tpu.pipeline_mode<synchronous>, transform_indices = @transform_6, window_bounds = array<i64: 1, 128>}, {transform_indices = @transform_7, window_bounds = array<i64: 2, 128>}]} {
    %c0 = arith.constant 0 : index
    %c0_0 = arith.constant 0 : index
    %c0_1 = arith.constant 0 : index
    %0 = vector.load %arg1[%c0, %c0_0, %c0_1] : memref<2x19x32xbf16, #tpu.memory_space<vmem>>, vector<1x19x32xbf16>
    %1 = vector.shape_cast %0 : vector<1x19x32xbf16> to vector<19x32xbf16>
    %2 = vector.extract_strided_slice %1 {offsets = [0, 0], sizes = [16, 32], strides = [1, 1]} : vector<19x32xbf16> to vector<16x32xbf16>
    %3 = vector.extract_strided_slice %1 {offsets = [1, 0], sizes = [16, 32], strides = [1, 1]} : vector<19x32xbf16> to vector<16x32xbf16>
    %4 = vector.extract_strided_slice %1 {offsets = [2, 0], sizes = [16, 32], strides = [1, 1]} : vector<19x32xbf16> to vector<16x32xbf16>
    %5 = vector.extract_strided_slice %1 {offsets = [3, 0], sizes = [16, 32], strides = [1, 1]} : vector<19x32xbf16> to vector<16x32xbf16>
    %6 = tpu.concatenate %2, %3, %4, %5 in 1 : vector<16x32xbf16>, vector<16x32xbf16>, vector<16x32xbf16>, vector<16x32xbf16> -> vector<16x128xbf16>
    %c1 = arith.constant 1 : index
    %c0_2 = arith.constant 0 : index
    %c0_3 = arith.constant 0 : index
    %7 = vector.load %arg1[%c1, %c0_2, %c0_3] : memref<2x19x32xbf16, #tpu.memory_space<vmem>>, vector<1x19x32xbf16>
    %8 = vector.shape_cast %7 : vector<1x19x32xbf16> to vector<19x32xbf16>
    %9 = vector.extract_strided_slice %8 {offsets = [0, 0], sizes = [16, 32], strides = [1, 1]} : vector<19x32xbf16> to vector<16x32xbf16>
    %10 = vector.extract_strided_slice %8 {offsets = [1, 0], sizes = [16, 32], strides = [1, 1]} : vector<19x32xbf16> to vector<16x32xbf16>
    %11 = vector.extract_strided_slice %8 {offsets = [2, 0], sizes = [16, 32], strides = [1, 1]} : vector<19x32xbf16> to vector<16x32xbf16>
    %12 = vector.extract_strided_slice %8 {offsets = [3, 0], sizes = [16, 32], strides = [1, 1]} : vector<19x32xbf16> to vector<16x32xbf16>
    %13 = tpu.concatenate %9, %10, %11, %12 in 1 : vector<16x32xbf16>, vector<16x32xbf16>, vector<16x32xbf16>, vector<16x32xbf16> -> vector<16x128xbf16>
    %14 = tpu.concatenate %6, %13 in 0 : vector<16x128xbf16>, vector<16x128xbf16> -> vector<32x128xbf16>
    %c0_4 = arith.constant 0 : index
    %c0_5 = arith.constant 0 : index
    %15 = vector.load %arg2[%c0_4, %c0_5] : memref<128x128xbf16, #tpu.memory_space<vmem>>, vector<128x128xbf16>
    %cst = arith.constant dense<0.000000e+00> : vector<32x128xf32>
    %16 = tpu.matmul %14, %15, %cst {dimension_numbers = #tpu.dot_dimension_numbers<[1], [0], [0], [1], [0, 0, 1, 1], [], []>} : vector<32x128xbf16>, vector<128x128xbf16>, vector<32x128xf32> -> vector<32x128xf32>
    %c0_6 = arith.constant 0 : index
    %c0_7 = arith.constant 0 : index
    %17 = vector.load %arg4[%c0_6, %c0_7] : memref<16x128xf32, #tpu.memory_space<vmem>>, vector<16x128xf32>
    %18 = vector.extract_strided_slice %16 {offsets = [0, 0], sizes = [16, 128], strides = [1, 1]} : vector<32x128xf32> to vector<16x128xf32>
    %19 = arith.addf %18, %17 : vector<16x128xf32>
    %cst_8 = arith.constant dense<0xFF800000> : vector<128xf32>
    %20 = vector.multi_reduction <maximumf>, %19, %cst_8 [0] : vector<16x128xf32> to vector<128xf32>
    %21 = vector.shape_cast %20 : vector<128xf32> to vector<1x128xf32>
    %22 = vector.extract_strided_slice %16 {offsets = [16, 0], sizes = [16, 128], strides = [1, 1]} : vector<32x128xf32> to vector<16x128xf32>
    %23 = arith.addf %22, %17 : vector<16x128xf32>
    %cst_9 = arith.constant dense<0xFF800000> : vector<128xf32>
    %24 = vector.multi_reduction <maximumf>, %23, %cst_9 [0] : vector<16x128xf32> to vector<128xf32>
    %25 = vector.shape_cast %24 : vector<128xf32> to vector<1x128xf32>
    %26 = tpu.concatenate %21, %25 in 0 : vector<1x128xf32>, vector<1x128xf32> -> vector<2x128xf32>
    %c0_10 = arith.constant 0 : index
    %c0_11 = arith.constant 0 : index
    %27 = vector.load %arg3[%c0_10, %c0_11] : memref<1x128xf32, #tpu.memory_space<vmem>>, vector<1x128xf32>
    %28 = vector.broadcast %27 : vector<1x128xf32> to vector<2x128xf32>
    %29 = arith.addf %26, %28 : vector<2x128xf32>
    %cst_12 = arith.constant 0.000000e+00 : f32
    %30 = vector.broadcast %cst_12 : f32 to vector<2x128xf32>
    %31 = arith.maximumf %29, %30 : vector<2x128xf32>
    %c0_13 = arith.constant 0 : index
    %c0_14 = arith.constant 0 : index
    %32 = vector.load %arg5[%c0_13, %c0_14] : memref<2x128xf32, #tpu.memory_space<vmem>>, vector<2x128xf32>
    %33 = arith.mulf %31, %32 : vector<2x128xf32>
    %34 = arith.truncf %33 : vector<2x128xf32> to vector<2x128xbf16>
    %c0_15 = arith.constant 0 : index
    %c0_16 = arith.constant 0 : index
    %35 = vector.load %arg6[%c0_15, %c0_16] : memref<128x128xbf16, #tpu.memory_space<vmem>>, vector<128x128xbf16>
    %cst_17 = arith.constant dense<0.000000e+00> : vector<2x128xf32>
    %36 = tpu.matmul %34, %35, %cst_17 {dimension_numbers = #tpu.dot_dimension_numbers<[1], [0], [0], [1], [0, 0, 1, 1], [], []>} : vector<2x128xbf16>, vector<128x128xbf16>, vector<2x128xf32> -> vector<2x128xf32>
    %c0_18 = arith.constant 0 : index
    %c0_19 = arith.constant 0 : index
    %37 = vector.load %arg7[%c0_18, %c0_19] : memref<1x128xf32, #tpu.memory_space<vmem>>, vector<1x128xf32>
    %38 = vector.broadcast %37 : vector<1x128xf32> to vector<2x128xf32>
    %39 = arith.addf %36, %38 : vector<2x128xf32>
    %c0_20 = arith.constant 0 : index
    %c0_21 = arith.constant 0 : index
    %40 = vector.load %arg8[%c0_20, %c0_21] : memref<2x128xf32, #tpu.memory_space<vmem>>, vector<2x128xf32>
    tpu.vector_store %arg8[%c0_20, %c0_21], %39 {strides = array<i32>} : memref<2x128xf32, #tpu.memory_space<vmem>>, vector<2x128xf32>,
    return
  }
  func.func @transform_0(%arg0: i32) -> (i32, i32, i32) {
    %c0_i32 = arith.constant 0 : i32
    %c0_i32_0 = arith.constant 0 : i32
    %c0_i32_1 = arith.constant 0 : i32
    return %arg0, %c0_i32, %c0_i32_0 : i32, i32, i32
  }
  func.func @transform_1(%arg0: i32) -> (i32, i32) {
    %c0_i32 = arith.constant 0 : i32
    %c0_i32_0 = arith.constant 0 : i32
    %c0_i32_1 = arith.constant 0 : i32
    return %c0_i32, %c0_i32_0 : i32, i32
  }
  func.func @transform_2(%arg0: i32) -> (i32, i32) {
    %c0_i32 = arith.constant 0 : i32
    %c0_i32_0 = arith.constant 0 : i32
    %c0_i32_1 = arith.constant 0 : i32
    return %c0_i32, %c0_i32_0 : i32, i32
  }
  func.func @transform_3(%arg0: i32) -> (i32, i32) {
    %c0_i32 = arith.constant 0 : i32
    %c0_i32_0 = arith.constant 0 : i32
    %c0_i32_1 = arith.constant 0 : i32
    return %c0_i32, %c0_i32_0 : i32, i32
  }
  func.func @transform_4(%arg0: i32) -> (i32, i32) {
    %c0_i32 = arith.constant 0 : i32
    %c0_i32_0 = arith.constant 0 : i32
    return %arg0, %c0_i32 : i32, i32
  }
  func.func @transform_5(%arg0: i32) -> (i32, i32) {
    %c0_i32 = arith.constant 0 : i32
    %c0_i32_0 = arith.constant 0 : i32
    %c0_i32_1 = arith.constant 0 : i32
    return %c0_i32, %c0_i32_0 : i32, i32
  }
  func.func @transform_6(%arg0: i32) -> (i32, i32) {
    %c0_i32 = arith.constant 0 : i32
    %c0_i32_0 = arith.constant 0 : i32
    %c0_i32_1 = arith.constant 0 : i32
    return %c0_i32, %c0_i32_0 : i32, i32
  }
  func.func @transform_7(%arg0: i32) -> (i32, i32) {
    %c0_i32 = arith.constant 0 : i32
    %c0_i32_0 = arith.constant 0 : i32
    return %arg0, %c0_i32 : i32, i32
  }
}

</mosaic_0001>

<bundles_post_ra>
// kernel: tpu_custom_call.1
= control target key start
LH: loop header
LB: loop body
LE: loop exit
PB: predicated region body
PF: predicated region fallthrough
CT: control target
= control target key end

     0   :  { %12 = vsyncpa [#allocation3], 0  ;;  %s671_s0 = inlined_call_operand.vmem [shape: bf16[2,19,32], index: 0, kind: input, shape index: {}]   ;;  %s672_s1 = inlined_call_operand.hbm [shape: bf16[128,128], index: 1, kind: input, shape index: {}]   ;;  %s673_s2 = inlined_call_operand.vmem [shape: f32[1,128], index: 2, kind: input, shape index: {}]   ;;  %s674_s3 = inlined_call_operand.vmem [shape: f32[16,128], index: 3, kind: input, shape index: {}]   ;;  %s675_s4 = inlined_call_operand.vmem [shape: f32[2,128], index: 4, kind: input, shape index: {}]   ;;  %s676_s5 = inlined_call_operand.hbm [shape: bf16[128,128], index: 5, kind: input, shape index: {}]   ;;  %s677_s6 = inlined_call_operand.vmem [shape: f32[1,128], index: 6, kind: input, shape index: {}]   ;;  %s678_s7 = inlined_call_operand.hbm [shape: f32[2,128], index: 7, kind: output, shape index: {}]  }
   0x1   :  { %13 = vsyncpa [#allocation6], 0 }
   0x2   :  { %14 = vsyncpa [#allocation4], 0  ;;  %s21_s26 = sshll.u32 %s672_s1, 4  ;;  %s564_s27 = smov [#allocation2]   ;;  %s22_s26 = int_to_ptr.hbm [resolvable:$true] %s21_s26 }
   0x3   :  { %s23_s28 = sshll.u32 %s564_s27, 4  ;;  %s40_s8 = sshll.u32 %s676_s5, 4  ;;  %s24_s28 = int_to_ptr.vmem [resolvable:$true] %s23_s28  ;;  %s41_s8 = int_to_ptr.hbm [resolvable:$true] %s40_s8 }
   0x4   :  { %s565_s9 = smov 64   ;;  %s566_s10 = smov 4  }
   0x5   :  { %29 = dma.hbm_to_vmem [thread:$0]  %s22_s26, 1024, %s24_s28, [#allocation3], %s565_s9, %s565_s9, %s566_s10  }
   0x6   :  { %s567_s11 = smov [#allocation5]  }
   0x7   :  { %s42_s12 = sshll.u32 %s567_s11, 4  ;;  %s43_s12 = int_to_ptr.vmem [resolvable:$true] %s42_s12 }
   0x8   :  { %48 = dma.hbm_to_vmem [thread:$0]  %s41_s8, 1024, %s43_s12, [#allocation6], %s565_s9, %s565_s9, %s566_s10  }
   0x9   :  { %558 = dma.done.wait [#allocation3], 1024  }
   0xa   :  { %559 = vsyncadd [#allocation3], 4294966272 }
   0xb   :  { %560 = dma.done.wait [#allocation6], 1024  }
   0xc   :  { %561 = vsyncadd [#allocation6], 4294966272  ;;  %v624_v0 = vld [vmem:[%s671_s0 + $0xc] sm:$0xff]  ;;  %v382_v1 = vld [vmem:[%s671_s0 + $0x14] sm:$0x3]  ;;  %vm85_vm2 = vcmask 1046528  }
   0xd   :  { %v632_v2 = vld [vmem:[%s671_s0] sm:$0xff]  ;;  %v123_v3 = vunpack.c.l.b16 %v382_v1  ;;  %v61_v4 = vld [vmem:[%s671_s0 + $0x8] sm:$0x3]  ;;  %v460_v5 = vld [vmem:[#allocation2 + $0x38] sm:$0xff]  ;;  %v126_v6 = vshrl.u32 %v624_v0, 16  ;;  %v128_v7 = vshll.u32 %v624_v0, 16 }
   0xe   :  { %v68_v8 = vunpack.c.l.b16 %v61_v4  ;;  %v74_v10 = vshll.u32 %v632_v2, 16  ;;  %v86_v11 = vrot.slane %v632_v2, 1  ;;  %469 = vmatpush.bf16.msra.mxu2 %v460_v5  ;;  %226 = vmatpush.bf16.msra.mxu0 %v460_v5  ;;  %v459_v12 = vld [vmem:[#allocation2 + $0x30] sm:$0xff]  ;;  %vm70_vm0 = vsmask.f32 7424  ;;  %v458_v26 = vld [vmem:[#allocation2 + $0x28] sm:$0xff] }
   0xf   :  { %v124_v9 = vpack.c.b16 %v123_v3, %v123_v3  ;;  %v130_v13 = vrot.slane %v128_v7, 1  ;;  %v144_v14 = vrot.slane %v126_v6, 1  ;;  %v145_v15 = vrot.slane %v128_v7, 2  ;;  %s568_s0 = smov 32   ;;  %v457_v41 = vld [vmem:[#allocation2 + $0x20] sm:$0xff]  ;;  %s569_s19 = smov 96  }
  0x10   :  { %v69_v16 = vpack.c.b16 %v68_v8, %v68_v8  ;;  %vm91_vm1 = vsmask.f32 6400  ;;  %v72_v20 = vshrl.u32 %v632_v2, 16  ;;  %v76_v27 = vrot.slane %v74_v10, 1  ;;  %v456_v47 = vld [vmem:[#allocation2 + $0x18] sm:$0xff]  ;;  %v455_v49 = vld [vmem:[#allocation2 + $0x10] sm:$0xff] }
  0x11   :  { %v133_v17 = vshll.u32 %v124_v9, 16  ;;  %v147_v18 = vshrl.u32 %v124_v9, 16  ;;  %v131_v19 = vor.u32 %v130_v13, %v126_v6  ;;  %v146_v23 = vor.u32 %v145_v15, %v144_v14  ;;  %v454_v50 = vld [vmem:[#allocation2 + $0x8] sm:$0xff]  ;;  %v453_v51 = vld [vmem:[#allocation2] sm:$0xff]  ;;  %v468_v1 = vld [vmem:[#allocation5 + $0x38] sm:$0xff]  ;;  %s570_s29 = smov [#allocation7]  }
  0x12   :  { %v87_v21 = vrot.slane %v69_v16, 1  ;;  %470 = vmatpush.bf16.msra.mxu2 %v459_v12  ;;  %227 = vmatpush.bf16.msra.mxu0 %v459_v12  ;;  %v79_v28 = vshll.u32 %v69_v16, 16  ;;  %v92_v30 = vrot.slane %v72_v20, 1  ;;  %v93_v33 = vrot.slane %v74_v10, 2  ;;  %v467_v3 = vld [vmem:[#allocation5 + $0x30] sm:$0xff]  ;;  %v466_v4 = vld [vmem:[#allocation5 + $0x28] sm:$0xff] }
  0x13   :  { %v135_v22 = vrot.slane %v133_v17, 1  ;;  %v149_v24 = vrot.slane %v147_v18, 1  ;;  %v150_v25 = vrot.slane %v133_v17, 2  ;;  %v95_v34 = vshrl.u32 %v69_v16, 16  ;;  %344 = vmatpush.bf16.msra.mxu1 %v468_v1  ;;  %v465_v5 = vld [vmem:[#allocation5 + $0x20] sm:$0xff]  ;;  %v463_v6 = vld [vmem:[#allocation5 + $0x10] sm:$0xff] }
  0x14   :  { %v88_v29 = vsel %vm85_vm2, %v86_v11, %v87_v21  ;;  %v139_v35 = vrot.slane %v624_v0, 1  ;;  %v98_v36 = vrot.slane %v79_v28, 2  ;;  %v140_v38 = vrot.slane %v124_v9, 1  ;;  %v462_v7 = vld [vmem:[#allocation5 + $0x8] sm:$0xff]  ;;  %v461_v8 = vld [vmem:[#allocation5] sm:$0xff]  ;;  %s363_s30 = sshll.u32 %s570_s29, 4  ;;  %s364_s30 = int_to_ptr.vmem [resolvable:$true] %s363_s30 }
  0x15   :  { %v136_v31 = vsel %vm70_vm0, %v131_v19, %v135_v22  ;;  %v151_v32 = vor.u32 %v150_v25, %v149_v24  ;;  %89 = vrot.lane.b32.xlu2 %v88_v29, %s565_s9  ;;  %v94_v39 = vor.u32 %v93_v33, %v92_v30  ;;  %v97_v40 = vrot.slane %v95_v34, 1  ;;  %v245_v10 = vld [vmem:[%s674_s3] sm:$0xff]  ;;  %v246_v11 = vld [vmem:[%s674_s3 + $0x8] sm:$0xff] }
  0x16   :  { %137 = vrot.lane.b32.xlu0 %v136_v31, %s568_s0  ;;  %471 = vmatpush.bf16.msra.mxu2 %v458_v26  ;;  %v77_v42 = vor.u32 %v76_v27, %v72_v20  ;;  %v81_v43 = vrot.slane %v79_v28, 1  ;;  %v141_v45 = vsel %vm85_vm2, %v139_v35, %v140_v38  ;;  %vm103_vm3 = vcmask 261120   ;;  %v484_v30 = vld [vmem:[%s673_s2] ss:$0 sm:$0xff] }
  0x17   :  { %v152_v37 = vsel %vm91_vm1, %v146_v23, %v151_v32  ;;  %228 = vmatpush.bf16.msra.mxu0 %v458_v26  ;;  %v99_v44 = vor.u32 %v98_v36, %v97_v40  ;;  %vm106_vm4 = vcmask 523264   ;;  %vm109_vm5 = vcmask 785408   ;;  %345 = vmatpush.bf16.msra.mxu1 %v467_v3  ;;  %v273_v35 = vld [vmem:[%s675_s4] sm:$0x3] }
  0x18   :  { %153 = vrot.lane.b32.xlu1 %v152_v37, %s569_s19  ;;  %v82_v48 = vsel %vm70_vm0, %v77_v42, %v81_v43  ;;  %vm265_vm6 = vcmask 1040384  }
  0x19   :  { %v100_v46 = vsel %vm91_vm1, %v94_v39, %v99_v44  ;;  %v485_v39 = vld [vmem:[%s677_s6] ss:$0 sm:$0xff] }
  0x1a   :  { %472 = vmatpush.bf16.msra.mxu2 %v457_v41 }
  0x1b   :  { %229 = vmatpush.bf16.msra.mxu0 %v457_v41  ;;  %346 = vmatpush.bf16.msra.mxu1 %v466_v4 }
  0x1d   :  { %101 = vrot.lane.b32.xlu2 %v100_v46, %s569_s19 }
  0x1e   :  { %142 = vrot.lane.b32.xlu0 %v141_v45, %s565_s9  ;;  %473 = vmatpush.bf16.msra.mxu2 %v456_v47  ;;  %s365_s9 = sshll.u32 %s678_s7, 4  ;;  %s366_s9 = int_to_ptr.hbm [resolvable:$true] %s365_s9 }
  0x1f   :  { %230 = vmatpush.bf16.msra.mxu0 %v456_v47  ;;  %347 = vmatpush.bf16.msra.mxu1 %v465_v5 }
  0x20   :  { %83 = vrot.lane.b32.xlu1 %v82_v48, %s568_s0 }
  0x22   :  { %474 = vmatpush.bf16.msra.mxu2 %v455_v49 }
  0x23   :  { %231 = vmatpush.bf16.msra.mxu0 %v455_v49 }
  0x26   :  { %475 = vmatpush.bf16.msra.mxu2 %v454_v50 }
  0x27   :  { %232 = vmatpush.bf16.msra.mxu0 %v454_v50 }
  0x2a   :  { %476 = vmatpush.bf16.msra.mxu2 %v453_v51 }
  0x2b   :  { %233 = vmatpush.bf16.msra.mxu0 %v453_v51 }
  0x6f   :  { %v90_v53 = vpop.permute.xlu2 %89 }
  0x77   :  { %v102_v60 = vpop.permute.xlu2 %101 }
  0x88   :  { %v138_v52 = vpop.permute.xlu0 %137 }
  0x89   :  { %v156_v55 = vsel %vm103_vm3, %v624_v0, %v138_v52  ;;  %v464_v0 = vld [vmem:[#allocation5 + $0x18] sm:$0xff] }
  0x8a   :  { %v154_v54 = vpop.permute.xlu1 %153  ;;  %348 = vmatpush.bf16.msra.mxu1 %v464_v0 }
  0x8e   :  { %349 = vmatpush.bf16.msra.mxu1 %v463_v6 }
  0x90   :  { %v143_v56 = vpop.permute.xlu0 %142 }
  0x91   :  { %v158_v57 = vsel %vm106_vm4, %v156_v55, %v143_v56 }
  0x92   :  { %v84_v58 = vpop.permute.xlu1 %83  ;;  %v160_v59 = vsel %vm109_vm5, %v158_v57, %v154_v54  ;;  %350 = vmatpush.bf16.msra.mxu1 %v462_v7 }
  0x93   :  { %v105_v61 = vsel %vm103_vm3, %v632_v2, %v84_v58  ;;  %239 = vmatmul.bf16.vlgmr.msra.gmra.mxu2 %v160_v59 }
  0x94   :  { %v108_v62 = vsel %vm106_vm4, %v105_v61, %v90_v53 }
  0x95   :  { %v111_v63 = vsel %vm109_vm5, %v108_v62, %v102_v60 }
  0x96   :  { %234 = vmatmul.bf16.vlgmr.msra.gmra.mxu0 %v111_v63  ;;  %351 = vmatpush.bf16.msra.mxu1 %v461_v8 }
 0x113   :  { %v235_v2 = vpop.f32.mrf.mxu0 }
 0x114   :  { %v247_v13 = vadd.f32 %v245_v10, %v235_v2 }
 0x116   :  { %v240_v9 = vpop.f32.mrf.mxu2 }
 0x117   :  { %v256_v17 = vadd.f32 %v245_v10, %v240_v9 }
 0x11b   :  { %v237_v12 = vpop.f32.mrf.mxu0 }
 0x11c   :  { %v248_v14 = vadd.f32 %v246_v11, %v237_v12 }
 0x11e   :  { %v249_v15 = vmax.f32 %v247_v13, %v248_v14  ;;  %v242_v16 = vpop.f32.mrf.mxu2 }
 0x11f   :  { %v257_v18 = vadd.f32 %v246_v11, %v242_v16 }
 0x120   :  { %v250_v19 = vrot.slane %v249_v15, 4 }
 0x121   :  { %v258_v20 = vmax.f32 %v256_v17, %v257_v18 }
 0x122   :  { %v251_v21 = vmax.f32 %v249_v15, %v250_v19 }
 0x123   :  { %v259_v22 = vrot.slane %v258_v20, 4 }
 0x124   :  { %v252_v23 = vrot.slane %v251_v21, 2 }
 0x125   :  { %v260_v24 = vmax.f32 %v258_v20, %v259_v22 }
 0x126   :  { %v253_v25 = vmax.f32 %v251_v21, %v252_v23 }
 0x127   :  { %v261_v26 = vrot.slane %v260_v24, 2 }
 0x128   :  { %v254_v27 = vrot.slane %v253_v25, 1 }
 0x129   :  { %v262_v28 = vmax.f32 %v260_v24, %v261_v26 }
 0x12a   :  { %v255_v31 = vmax.f32 %v253_v25, %v254_v27 }
 0x12b   :  { %v263_v29 = vrot.slane %v262_v28, 1 }
 0x12d   :  { %v264_v32 = vmax.f32 %v262_v28, %v263_v29 }
 0x12f   :  { %v266_v33 = vsel %vm265_vm6, %v255_v31, %v264_v32 }
 0x130   :  { %v271_v34 = vadd.f32 %v484_v30, %v266_v33 }
 0x132   :  { %v272_v36 = vmax.f32 %v271_v34, 0.0 }
 0x134   :  { %v274_v37 = vmul.f32 %v273_v35, %v272_v36 }
 0x136   :  { %v275_v38 = vpack.c.bf16 %v274_v37, %v274_v37 }
 0x138   :  { %352 = vmatmul.bf16.vlgmr.msra.gmra.mxu1 %v275_v38 }
 0x1b5   :  { %v353_v40 = vpop.f32.mrf.mxu1 }
 0x1b6   :  { %v354_v41 = vadd.f32 %v485_v39, %v353_v40 }
 0x1b8   :  { %357 = vst [vmem:[#allocation7] sm:$0x3] %v354_v41 }
 0x1b9   :  { %368 = dma.vmem_to_hbm [thread:$0]  %s364_s30, 32, %s366_s9, [#allocation4]  }
 0x1bd   :  { %v355_v42 = vpop.f32.mrf.mxu1 }
 0x1be   :  { %562 = dma.done.wait [#allocation4], 32  }
 0x1bf   :  { %563 = vsyncadd [#allocation4], 4294967264 }
 0x1c0   :  { %373 = vsyncpa [#allocation3], 1 }
 0x1c1   :  { %374 = vsyncpa [#allocation6], 1 }
 0x1c2   :  { %375 = vsyncpa [#allocation4], 1 }

</bundles_post_ra>
